<compile_context>
chip_gen: v7x
topology: tpu7x:2x2x1
jax: 0.10.0
libtpu: 0.0.40
codegen_flags: <defaults>
</compile_context>

<pallas_src>
import jax
import jax.numpy as jnp
from jax.experimental import pallas as pl
from jax.experimental.pallas import tpu as pltpu

IN_FEATURES = 12 * 8 * 8   # 768
OUT_FEATURES = 1


def linear_kernel(x_ref, w_ref, b_ref, o_ref):
    # x_ref: (TB, 768) input dtype; w_ref: (768, 1); b_ref: (1, 1) SMEM; o_ref: (TB, 1) f32
    x = x_ref[...].astype(jnp.float32)          # in-kernel cast (forward: x.float())
    w = w_ref[...].astype(jnp.float32)          # (768, 1), resident in VMEM
    acc = jnp.dot(x, w, preferred_element_type=jnp.float32)   # MXU matvec -> (TB, 1)
    o_ref[...] = acc + b_ref[0, 0]              # scalar bias from SMEM


def _choose_tile_rows(batch, itemsize, target_bytes=6 << 20, max_rows=8192):
    """Pick a sublane-aligned batch tile sized by bytes (~6 MiB of input/buffer)."""
    rows = (target_bytes // (IN_FEATURES * itemsize)) // 8 * 8
    rows = max(8, min(rows, max_rows))
    if batch <= rows:
        # Single block covering the whole batch (full-array-dim exception to (8,128)).
        rows = batch
    return rows


def mock_model_forward(x, weight, bias, *, target_block_bytes=6 << 20):
    """x: (B, 12, 8, 8) any real dtype; weight: (1, 768); bias: (1,)  -> (B, 1) f32."""
    B = x.shape[0]
    # torch.nn.Flatten over contiguous NCHW is a free reshape; keep original dtype.
    x2 = x.reshape(B, IN_FEATURES)

    tb = _choose_tile_rows(B, x2.dtype.itemsize, target_block_bytes)
    grid = (pl.cdiv(B, tb),)   # partial last block handled by the pipeline; no jnp.pad

    # Weight as (768, 1) so the kernel contraction runs on the MXU.
    w = weight.reshape(OUT_FEATURES, IN_FEATURES).T          # (768, 1)
    b = bias.astype(jnp.float32).reshape(1, 1)               # scalar for SMEM

    cost = pl.CostEstimate(
        flops=2 * B * IN_FEATURES,
        transcendentals=0,
        bytes_accessed=(B * IN_FEATURES * x2.dtype.itemsize
                        + IN_FEATURES * OUT_FEATURES * w.dtype.itemsize
                        + B * OUT_FEATURES * 4),
    )

    out = pl.pallas_call(
        linear_kernel,
        out_shape=jax.ShapeDtypeStruct((B, OUT_FEATURES), jnp.float32),
        grid=grid,
        in_specs=[
            # x: tiled over the batch; double-buffered by the Pallas pipeline.
            pl.BlockSpec((tb, IN_FEATURES), lambda i: (i, 0)),
            # weight: same block every step -> stays resident in VMEM.
            pl.BlockSpec((IN_FEATURES, OUT_FEATURES), lambda i: (0, 0)),
            # bias: single scalar in SMEM.
            pl.BlockSpec(memory_space=pltpu.MemorySpace.SMEM),
        ],
        out_specs=pl.BlockSpec((tb, OUT_FEATURES), lambda i: (i, 0)),
        compiler_params=pltpu.CompilerParams(
            dimension_semantics=("parallel",),      # megacore split of the batch
            vmem_limit_bytes=32 * 1024 * 1024,      # ~15 MiB actual use; headroom on v7x
        ),
        cost_estimate=cost,
    )(x2, w, b)

    return out


if __name__ == "__main__":
    key = jax.random.PRNGKey(0)
    k_x, k_w, k_b = jax.random.split(key, 3)

    # Deterministic synthetic parameters (PyTorch Linear shapes: weight (1, 768), bias (1,)).
    bound = 1.0 / jnp.sqrt(jnp.float32(IN_FEATURES))
    weight = jax.random.uniform(
        k_w, (OUT_FEATURES, IN_FEATURES), jnp.float32, -bound, bound)
    bias = jax.random.uniform(k_b, (OUT_FEATURES,), jnp.float32, -bound, bound)

    # Example input at the shape the forward implies: (batch=2, C=12, H=8, W=8).
    x = jax.random.normal(k_x, (2, 12, 8, 8), jnp.float32)

    out = mock_model_forward(x, weight, bias)
    jax.block_until_ready(out)

    # Cross-check against plain-JAX reference (forward: x.float(); flatten; linear).
    ref = x.astype(jnp.float32).reshape(2, -1) @ weight.T + bias
    assert out.shape == (2, 1)
    assert jnp.allclose(out, ref, atol=1e-5, rtol=1e-5)

    print("KERNEL_OK")
</pallas_src>

<mosaic_0001>
module attributes {stable_mosaic.version = 11 : i64} {
  func.func @linear_kernel(%arg0: i32, %arg1: memref<2x768xf32, #tpu.memory_space<vmem>>, %arg2: memref<768x1xf32, #tpu.memory_space<vmem>>, %arg3: memref<1x1xf32, #tpu.memory_space<smem>>, %arg4: memref<2x1xf32, #tpu.memory_space<vmem>>) attributes {dimension_semantics = [#tpu.dimension_semantics<parallel>], iteration_bounds = array<i64: 1>, scalar_prefetch = 0 : i64, scratch_operands = 0 : i64, tpu.core_type = #tpu.core_type<tc>, window_params = [{transform_indices = @transform_0, window_bounds = array<i64: 2, 768>}, {pipeline_mode = #tpu.pipeline_mode<synchronous>, transform_indices = @transform_1, window_bounds = array<i64: 768, 1>}, {transform_indices = @transform_2, window_bounds = array<i64: 1, 1>}, {transform_indices = @transform_3, window_bounds = array<i64: 2, 1>}]} {
    %c0 = arith.constant 0 : index
    %c0_0 = arith.constant 0 : index
    %0 = vector.load %arg1[%c0, %c0_0] : memref<2x768xf32, #tpu.memory_space<vmem>>, vector<2x768xf32>
    %c0_1 = arith.constant 0 : index
    %c0_2 = arith.constant 0 : index
    %1 = vector.load %arg2[%c0_1, %c0_2] : memref<768x1xf32, #tpu.memory_space<vmem>>, vector<768x1xf32>
    %cst = arith.constant dense<0.000000e+00> : vector<2x1xf32>
    %2 = tpu.matmul %0, %1, %cst {dimension_numbers = #tpu.dot_dimension_numbers<[1], [0], [0], [1], [0, 0, 1, 1], [], []>} : vector<2x768xf32>, vector<768x1xf32>, vector<2x1xf32> -> vector<2x1xf32>
    %c0_3 = arith.constant 0 : index
    %c0_4 = arith.constant 0 : index
    %3 = memref.load %arg3[%c0_3, %c0_4] : memref<1x1xf32, #tpu.memory_space<smem>>
    %4 = vector.broadcast %3 : f32 to vector<2x1xf32>
    %5 = arith.addf %2, %4 : vector<2x1xf32>
    %c0_5 = arith.constant 0 : index
    %c0_6 = arith.constant 0 : index
    %6 = vector.load %arg4[%c0_5, %c0_6] : memref<2x1xf32, #tpu.memory_space<vmem>>, vector<2x1xf32>
    tpu.vector_store %arg4[%c0_5, %c0_6], %5 {strides = array<i32>} : memref<2x1xf32, #tpu.memory_space<vmem>>, vector<2x1xf32>,
    return
  }
  func.func @transform_0(%arg0: i32) -> (i32, i32) {
    %c0_i32 = arith.constant 0 : i32
    %c0_i32_0 = arith.constant 0 : i32
    return %arg0, %c0_i32 : i32, i32
  }
  func.func @transform_1(%arg0: i32) -> (i32, i32) {
    %c0_i32 = arith.constant 0 : i32
    %c0_i32_0 = arith.constant 0 : i32
    %c0_i32_1 = arith.constant 0 : i32
    return %c0_i32, %c0_i32_0 : i32, i32
  }
  func.func @transform_2(%arg0: i32) -> (i32, i32) {
    %c0_i32 = arith.constant 0 : i32
    %c0_i32_0 = arith.constant 0 : i32
    %c0_i32_1 = arith.constant 0 : i32
    return %c0_i32, %c0_i32_0 : i32, i32
  }
  func.func @transform_3(%arg0: i32) -> (i32, i32) {
    %c0_i32 = arith.constant 0 : i32
    %c0_i32_0 = arith.constant 0 : i32
    return %arg0, %c0_i32 : i32, i32
  }
}

</mosaic_0001>

<bundles_post_ra>
// kernel: tpu_custom_call.1
= control target key start
LH: loop header
LB: loop body
LE: loop exit
PB: predicated region body
PF: predicated region fallthrough
CT: control target
= control target key end

     0   :  { %v568_v43 = vmov 1983009808   ;;  %v121_v45 = vlaneseq  ;;  %vm358_vm0 = vcmask 1024   ;;  %s889_s1 = inlined_call_operand.vmem [shape: f32[768,1], index: 1, kind: input, shape index: {}]   ;;  %s890_s0 = inlined_call_operand.vmem [shape: f32[2,768], index: 0, kind: input, shape index: {}]   ;;  %s891_s2 = inlined_call_operand.<no memory space> [shape: f32[1,1], index: 2, kind: input, shape index: {}]   ;;  %s892_s3 = inlined_call_operand.vmem [shape: f32[2,1], index: 3, kind: output, shape index: {}]  }
   0x1   :  { %v33_v0 = vld [vmem:[%s889_s1 + $0x80] sm:$0xff]  ;;  %v34_v1 = vld [vmem:[%s889_s1 + $0x88] sm:$0xff]  ;;  %v35_v11 = vld [vmem:[%s889_s1 + $0x90] sm:$0xff]  ;;  %v119_v44 = vunpack.c.l.s4 %v568_v43 }
   0x2   :  { %v17_v2 = vld [vmem:[%s889_s1] sm:$0xff]  ;;  %v470_v3 = vpack.c.bf16 %v34_v1, %v33_v0  ;;  %v18_v4 = vld [vmem:[%s889_s1 + $0x8] sm:$0xff]  ;;  %v36_v13 = vld [vmem:[%s889_s1 + $0x98] sm:$0xff]  ;;  %v122_v60 = vshrl.u32 %v121_v45, 7 }
   0x3   :  { %v65_v5 = vld [vmem:[%s889_s1 + $0x180] sm:$0xff]  ;;  %v66_v6 = vld [vmem:[%s889_s1 + $0x188] sm:$0xff]  ;;  %v472_v7 = vpack.c.bf16 %v18_v4, %v17_v2  ;;  %v19_v14 = vld [vmem:[%s889_s1 + $0x10] sm:$0xff]  ;;  %v474_v16 = vpack.c.bf16 %v36_v13, %v35_v11  ;;  %v120_v59 = vunpack.c.0.s8 %v119_v44 }
   0x4   :  { %v502_v8 = vpack.c.bf16 %v66_v6, %v65_v5  ;;  %v49_v9 = vld [vmem:[%s889_s1 + $0x100] sm:$0xff]  ;;  %v50_v10 = vld [vmem:[%s889_s1 + $0x108] sm:$0xff]  ;;  %471 = vmatprep.subr.bf16.mxu0 %v470_v3  ;;  %v20_v15 = vld [vmem:[%s889_s1 + $0x18] sm:$0xff] }
   0x5   :  { %v504_v12 = vpack.c.bf16 %v50_v10, %v49_v9  ;;  %473 = vmatpush3.bf16.msra.mxu0 %v472_v7  ;;  %v476_v17 = vpack.c.bf16 %v20_v15, %v19_v14  ;;  %v67_v18 = vld [vmem:[%s889_s1 + $0x190] sm:$0xff]  ;;  %v68_v19 = vld [vmem:[%s889_s1 + $0x198] sm:$0xff]  ;;  %v37_v23 = vld [vmem:[%s889_s1 + $0xa0] sm:$0xff]  ;;  %v123_v10 = vsub.s32 %v120_v59, %v122_v60 }
   0x6   :  { %503 = vmatprep.subr.bf16.mxu1 %v502_v8  ;;  %v51_v20 = vld [vmem:[%s889_s1 + $0x110] sm:$0xff]  ;;  %v506_v21 = vpack.c.bf16 %v68_v19, %v67_v18  ;;  %v52_v22 = vld [vmem:[%s889_s1 + $0x118] sm:$0xff]  ;;  %v38_v24 = vld [vmem:[%s889_s1 + $0xa8] sm:$0xff]  ;;  %475 = vmatprep.subr.bf16.mxu0 %v474_v16 }
   0x7   :  { %505 = vmatpush3.bf16.msra.mxu1 %v504_v12  ;;  %v508_v25 = vpack.c.bf16 %v52_v22, %v51_v20  ;;  %v478_v26 = vpack.c.bf16 %v38_v24, %v37_v23  ;;  %v21_v27 = vld [vmem:[%s889_s1 + $0x20] sm:$0xff]  ;;  %v22_v28 = vld [vmem:[%s889_s1 + $0x28] sm:$0xff]  ;;  %v39_v35 = vld [vmem:[%s889_s1 + $0xb0] sm:$0xff] }
   0x8   :  { %v69_v29 = vld [vmem:[%s889_s1 + $0x1a0] sm:$0xff]  ;;  %507 = vmatprep.subr.bf16.mxu1 %v506_v21  ;;  %v70_v30 = vld [vmem:[%s889_s1 + $0x1a8] sm:$0xff]  ;;  %v480_v33 = vpack.c.bf16 %v22_v28, %v21_v27  ;;  %v40_v36 = vld [vmem:[%s889_s1 + $0xb8] sm:$0xff] }
   0x9   :  { %v53_v31 = vld [vmem:[%s889_s1 + $0x120] sm:$0xff]  ;;  %v54_v32 = vld [vmem:[%s889_s1 + $0x128] sm:$0xff]  ;;  %477 = vmatpush3.bf16.msra.mxu0 %v476_v17  ;;  %v510_v34 = vpack.c.bf16 %v70_v30, %v69_v29  ;;  %v23_v37 = vld [vmem:[%s889_s1 + $0x30] sm:$0xff]  ;;  %v482_v39 = vpack.c.bf16 %v40_v36, %v39_v35 }
   0xa   :  { %479 = vmatprep.subr.bf16.mxu0 %v478_v26  ;;  %v512_v38 = vpack.c.bf16 %v54_v32, %v53_v31  ;;  %v24_v40 = vld [vmem:[%s889_s1 + $0x38] sm:$0xff]  ;;  %v71_v41 = vld [vmem:[%s889_s1 + $0x1b0] sm:$0xff]  ;;  %v41_v49 = vld [vmem:[%s889_s1 + $0xc0] sm:$0xff] }
   0xb   :  { %509 = vmatpush3.bf16.msra.mxu1 %v508_v25  ;;  %v72_v42 = vld [vmem:[%s889_s1 + $0x1b8] sm:$0xff]  ;;  %v55_v47 = vld [vmem:[%s889_s1 + $0x130] sm:$0xff]  ;;  %v42_v50 = vld [vmem:[%s889_s1 + $0xc8] sm:$0xff]  ;;  %v484_v51 = vpack.c.bf16 %v24_v40, %v23_v37 }
   0xc   :  { %511 = vmatprep.subr.bf16.mxu1 %v510_v34  ;;  %v514_v46 = vpack.c.bf16 %v72_v42, %v71_v41  ;;  %v56_v48 = vld [vmem:[%s889_s1 + $0x138] sm:$0xff]  ;;  %v73_v52 = vld [vmem:[%s889_s1 + $0x1c0] sm:$0xff]  ;;  %v74_v53 = vld [vmem:[%s889_s1 + $0x1c8] sm:$0xff]  ;;  %v486_v55 = vpack.c.bf16 %v42_v50, %v41_v49 }
   0xd   :  { %481 = vmatpush3.bf16.msra.mxu0 %v480_v33  ;;  %v516_v54 = vpack.c.bf16 %v56_v48, %v55_v47  ;;  %v25_v56 = vld [vmem:[%s889_s1 + $0x40] sm:$0xff]  ;;  %v26_v57 = vld [vmem:[%s889_s1 + $0x48] sm:$0xff]  ;;  %v518_v61 = vpack.c.bf16 %v74_v53, %v73_v52  ;;  %v43_v63 = vld [vmem:[%s889_s1 + $0xd0] sm:$0xff] }
   0xe   :  { %483 = vmatprep.subr.bf16.mxu0 %v482_v39  ;;  %v57_v58 = vld [vmem:[%s889_s1 + $0x140] sm:$0xff]  ;;  %v58_v62 = vld [vmem:[%s889_s1 + $0x148] sm:$0xff]  ;;  %v44_v0 = vld [vmem:[%s889_s1 + $0xd8] sm:$0xff]  ;;  %v488_v3 = vpack.c.bf16 %v26_v57, %v25_v56 }
   0xf   :  { %513 = vmatpush3.bf16.msra.mxu1 %v512_v38  ;;  %v75_v1 = vld [vmem:[%s889_s1 + $0x1d0] sm:$0xff]  ;;  %v76_v2 = vld [vmem:[%s889_s1 + $0x1d8] sm:$0xff]  ;;  %v520_v5 = vpack.c.bf16 %v58_v62, %v57_v58  ;;  %v490_v6 = vpack.c.bf16 %v44_v0, %v43_v63  ;;  %v45_v12 = vld [vmem:[%s889_s1 + $0xe0] sm:$0xff] }
  0x10   :  { %515 = vmatprep.subr.bf16.mxu1 %v514_v46  ;;  %v27_v4 = vld [vmem:[%s889_s1 + $0x50] sm:$0xff]  ;;  %v28_v7 = vld [vmem:[%s889_s1 + $0x58] sm:$0xff]  ;;  %v522_v11 = vpack.c.bf16 %v76_v2, %v75_v1  ;;  %v46_v13 = vld [vmem:[%s889_s1 + $0xe8] sm:$0xff] }
  0x11   :  { %485 = vmatpush3.bf16.msra.mxu0 %v484_v51  ;;  %v59_v8 = vld [vmem:[%s889_s1 + $0x150] sm:$0xff]  ;;  %v60_v9 = vld [vmem:[%s889_s1 + $0x158] sm:$0xff]  ;;  %v77_v14 = vld [vmem:[%s889_s1 + $0x1e0] sm:$0xff]  ;;  %v492_v16 = vpack.c.bf16 %v28_v7, %v27_v4  ;;  %v494_v19 = vpack.c.bf16 %v46_v13, %v45_v12 }
  0x12   :  { %487 = vmatprep.subr.bf16.mxu0 %v486_v55  ;;  %v78_v15 = vld [vmem:[%s889_s1 + $0x1e8] sm:$0xff]  ;;  %v524_v17 = vpack.c.bf16 %v60_v9, %v59_v8  ;;  %v15_v18 = vld [vmem:[%s890_s0] sm:$0xff]  ;;  %v47_v27 = vld [vmem:[%s889_s1 + $0xf0] sm:$0xff] }
  0x13   :  { %517 = vmatpush3.bf16.msra.mxu1 %v516_v54  ;;  %v29_v20 = vld [vmem:[%s889_s1 + $0x60] sm:$0xff]  ;;  %v30_v21 = vld [vmem:[%s889_s1 + $0x68] sm:$0xff]  ;;  %v124_v23 = vrot.slane %v15_v18, %v123_v10  ;;  %v117_v24 = vcombine.high %v15_v18, %v15_v18  ;;  %v526_v25 = vpack.c.bf16 %v78_v15, %v77_v14  ;;  %v48_v28 = vld [vmem:[%s889_s1 + $0xf8] sm:$0xff] }
  0x14   :  { %519 = vmatprep.subr.bf16.mxu1 %v518_v61  ;;  %v61_v22 = vld [vmem:[%s889_s1 + $0x160] sm:$0xff]  ;;  %v62_v26 = vld [vmem:[%s889_s1 + $0x168] sm:$0xff]  ;;  %v79_v29 = vld [vmem:[%s889_s1 + $0x1f0] sm:$0xff]  ;;  %v496_v33 = vpack.c.bf16 %v30_v21, %v29_v20  ;;  %v498_v35 = vpack.c.bf16 %v48_v28, %v47_v27 }
  0x15   :  { %489 = vmatpush3.bf16.msra.mxu0 %v488_v3  ;;  %v80_v30 = vld [vmem:[%s889_s1 + $0x1f8] sm:$0xff]  ;;  %v132_v31 = vcombine.high %v124_v23, %v124_v23  ;;  %v131_v32 = vrot.slane %v117_v24, %v123_v10  ;;  %v528_v34 = vpack.c.bf16 %v62_v26, %v61_v22  ;;  %v31_v36 = vld [vmem:[%s889_s1 + $0x70] sm:$0xff]  ;;  %v97_v42 = vld [vmem:[%s889_s1 + $0x280] sm:$0xff] }
  0x16   :  { %491 = vmatprep.subr.bf16.mxu0 %v490_v6  ;;  %v32_v37 = vld [vmem:[%s889_s1 + $0x78] sm:$0xff]  ;;  %v63_v38 = vld [vmem:[%s889_s1 + $0x170] sm:$0xff]  ;;  %v530_v40 = vpack.c.bf16 %v80_v30, %v79_v29  ;;  %v98_v43 = vld [vmem:[%s889_s1 + $0x288] sm:$0xff] }
  0x17   :  { %521 = vmatpush3.bf16.msra.mxu1 %v520_v5  ;;  %v133_v39 = vcombine.high %v131_v32, %v131_v32  ;;  %212 = vmatprep.mubr.f32.mxu0 %v132_v31  ;;  %v64_v41 = vld [vmem:[%s889_s1 + $0x178] sm:$0xff]  ;;  %v500_v44 = vpack.c.bf16 %v32_v37, %v31_v36  ;;  %v534_v46 = vpack.c.bf16 %v98_v43, %v97_v42  ;;  %v81_v47 = vld [vmem:[%s889_s1 + $0x200] sm:$0xff]  ;;  %v82_v48 = vld [vmem:[%s889_s1 + $0x208] sm:$0xff]  ;;  %v114_v31 = vstv %s891_s2 }
  0x18   :  { %523 = vmatprep.subr.bf16.mxu1 %v522_v11  ;;  %v532_v45 = vpack.c.bf16 %v64_v41, %v63_v38  ;;  %v99_v49 = vld [vmem:[%s889_s1 + $0x290] sm:$0xff]  ;;  %v100_v50 = vld [vmem:[%s889_s1 + $0x298] sm:$0xff]  ;;  %v536_v51 = vpack.c.bf16 %v82_v48, %v81_v47  ;;  %v364_v52 = vld.sshfl [vmem:[%s890_s0 + $0x8] sm:$0x33 pattern:$0x76325410] }
  0x19   :  { %493 = vmatpush3.bf16.msra.mxu0 %v492_v16  ;;  %282 = vmatprep.mubr.f32.mxu1 %v133_v39  ;;  %v538_v53 = vpack.c.bf16 %v100_v50, %v99_v49  ;;  %v83_v54 = vld [vmem:[%s889_s1 + $0x210] sm:$0xff]  ;;  %v84_v55 = vld [vmem:[%s889_s1 + $0x218] sm:$0xff]  ;;  %v141_v56 = vcombine.high %v364_v52, %v364_v52  ;;  %v101_v57 = vld [vmem:[%s889_s1 + $0x2a0] sm:$0xff] }
  0x1a   :  { %495 = vmatprep.subr.bf16.mxu0 %v494_v19  ;;  %v102_v58 = vld [vmem:[%s889_s1 + $0x2a8] sm:$0xff]  ;;  %v540_v59 = vpack.c.bf16 %v84_v55, %v83_v54  ;;  %v85_v61 = vld [vmem:[%s889_s1 + $0x220] sm:$0xff]  ;;  %v103_v63 = vld [vmem:[%s889_s1 + $0x2b0] sm:$0xff] }
  0x1b   :  { %525 = vmatpush3.bf16.msra.mxu1 %v524_v17  ;;  %v542_v60 = vpack.c.bf16 %v102_v58, %v101_v57  ;;  %v86_v62 = vld [vmem:[%s889_s1 + $0x228] sm:$0xff]  ;;  %v104_v0 = vld [vmem:[%s889_s1 + $0x2b8] sm:$0xff]  ;;  %v87_v3 = vld [vmem:[%s889_s1 + $0x230] sm:$0xff] }
  0x1c   :  { %527 = vmatprep.subr.bf16.mxu1 %v526_v25  ;;  %v544_v1 = vpack.c.bf16 %v86_v62, %v85_v61  ;;  %v546_v2 = vpack.c.bf16 %v104_v0, %v103_v63  ;;  %v88_v4 = vld [vmem:[%s889_s1 + $0x238] sm:$0xff]  ;;  %v105_v5 = vld [vmem:[%s889_s1 + $0x2c0] sm:$0xff]  ;;  %v106_v6 = vld [vmem:[%s889_s1 + $0x2c8] sm:$0xff] }
  0x1d   :  { %497 = vmatpush3.bf16.msra.mxu0 %v496_v33  ;;  %v548_v7 = vpack.c.bf16 %v88_v4, %v87_v3  ;;  %v550_v8 = vpack.c.bf16 %v106_v6, %v105_v5  ;;  %v89_v9 = vld [vmem:[%s889_s1 + $0x240] sm:$0xff]  ;;  %v90_v10 = vld [vmem:[%s889_s1 + $0x248] sm:$0xff]  ;;  %v107_v11 = vld [vmem:[%s889_s1 + $0x2d0] sm:$0xff] }
  0x1e   :  { %499 = vmatprep.subr.bf16.mxu0 %v498_v35  ;;  %v108_v12 = vld [vmem:[%s889_s1 + $0x2d8] sm:$0xff]  ;;  %v552_v13 = vpack.c.bf16 %v90_v10, %v89_v9  ;;  %v91_v15 = vld [vmem:[%s889_s1 + $0x250] sm:$0xff]  ;;  %v109_v17 = vld [vmem:[%s889_s1 + $0x2e0] sm:$0xff] }
  0x1f   :  { %529 = vmatpush3.bf16.msra.mxu1 %v528_v34  ;;  %v554_v14 = vpack.c.bf16 %v108_v12, %v107_v11  ;;  %v92_v16 = vld [vmem:[%s889_s1 + $0x258] sm:$0xff]  ;;  %v110_v18 = vld [vmem:[%s889_s1 + $0x2e8] sm:$0xff]  ;;  %v93_v21 = vld [vmem:[%s889_s1 + $0x260] sm:$0xff] }
  0x20   :  { %531 = vmatprep.subr.bf16.mxu1 %v530_v40  ;;  %v556_v19 = vpack.c.bf16 %v92_v16, %v91_v15  ;;  %v558_v20 = vpack.c.bf16 %v110_v18, %v109_v17  ;;  %v94_v22 = vld [vmem:[%s889_s1 + $0x268] sm:$0xff]  ;;  %v112_v24 = vld [vmem:[%s889_s1 + $0x2f8] sm:$0xff]  ;;  %v95_v27 = vld [vmem:[%s889_s1 + $0x270] sm:$0xff] }
  0x21   :  { %501 = vmatpush3.bf16.msra.mxu0 %v500_v44  ;;  %v560_v25 = vpack.c.bf16 %v94_v22, %v93_v21  ;;  %v96_v28 = vld [vmem:[%s889_s1 + $0x278] sm:$0xff] }
  0x22   :  { %535 = vmatprep.subr.bf16.mxu0 %v534_v46  ;;  %v564_v29 = vpack.c.bf16 %v96_v28, %v95_v27 }
  0x23   :  { %533 = vmatpush3.bf16.msra.mxu1 %v532_v45 }
  0x24   :  { %213 = vmatmul.mubr.f32.vlgmr.msra.gmra.mrb[0].mxu0 %v124_v23  ;;  %v111_v23 = vld [vmem:[%s889_s1 + $0x2f0] sm:$0xff] }
  0x25   :  { %537 = vmatpush3.bf16.msra.mxu0 %v536_v51  ;;  %352 = vmatprep.mubr.f32.mxu0 %v141_v56  ;;  %v562_v26 = vpack.c.bf16 %v112_v24, %v111_v23 }
  0x26   :  { %283 = vmatmul.mubr.f32.vlgmr.msra.gmra.mrb[0].mxu1 %v131_v32  ;;  %539 = vmatprep.subr.bf16.mxu0 %v538_v53 }
  0x29   :  { %541 = vmatpush3.bf16.msra.mxu0 %v540_v59 }
  0x2a   :  { %543 = vmatprep.subr.bf16.mxu0 %v542_v60 }
  0x2d   :  { %545 = vmatpush3.bf16.msra.mxu0 %v544_v1 }
  0x2e   :  { %547 = vmatprep.subr.bf16.mxu0 %v546_v2 }
  0x31   :  { %549 = vmatpush3.bf16.msra.mxu0 %v548_v7 }
  0x32   :  { %551 = vmatprep.subr.bf16.mxu0 %v550_v8 }
  0x35   :  { %553 = vmatpush3.bf16.msra.mxu0 %v552_v13 }
  0x36   :  { %555 = vmatprep.subr.bf16.mxu0 %v554_v14 }
  0x39   :  { %557 = vmatpush3.bf16.msra.mxu0 %v556_v19 }
  0x3a   :  { %559 = vmatprep.subr.bf16.mxu0 %v558_v20 }
  0x3d   :  { %561 = vmatpush3.bf16.msra.mxu0 %v560_v25 }
  0x3e   :  { %563 = vmatprep.subr.bf16.mxu0 %v562_v26 }
  0x41   :  { %565 = vmatpush3.bf16.msra.mxu0 %v564_v29 }
  0x44   :  { %353 = vmatmul.mubr.f32.vlgmr.msra.gmra.mrb[2].mxu0 %v364_v52 }
  0xf7   :  { %v397_v30 = vpop.f32.mrb[0].mxu0 }
  0xf8   :  { %v398_v32 = vpop.f32.mrb[1].mxu0 }
  0xf9   :  { %v432_v33 = vpop.f32.mrb[0].mxu1  ;;  %v399_v34 = vadd.f32 %v398_v32, %v397_v30 }
  0xfa   :  { %v433_v35 = vpop.f32.mrb[1].mxu1 }
  0xfb   :  { %v434_v36 = vadd.f32 %v433_v35, %v432_v33  ;;  %v215_v37 = vadd.f32 %v399_v34, %v114_v31 }
  0xfd   :  { %v285_v38 = vadd.f32 %v434_v36, %v215_v37 }
 0x117   :  { %v467_v39 = vpop.f32.mrb[2].mxu0 }
 0x118   :  { %v468_v40 = vpop.f32.mrb[3].mxu0 }
 0x119   :  { %v469_v41 = vadd.f32 %v468_v40, %v467_v39 }
 0x11b   :  { %v355_v42 = vadd.f32 %v469_v41, %v285_v38 }
 0x11d   :  { %359 = vst.msk [vmem:[%s892_s3] sm:$0x3] %vm358_vm0, %v355_v42 }

</bundles_post_ra>
